<compile_context>
chip_gen: v7x
topology: tpu7x:2x2x1
jax: 0.10.0
libtpu: 0.0.40
codegen_flags: <defaults>
</compile_context>

<pallas_src>
import functools
import math

import jax
import jax.numpy as jnp
from jax.experimental import pallas as pl
from jax.experimental.pallas import tpu as pltpu


def _round_up(x: int, m: int) -> int:
    return ((x + m - 1) // m) * m


# --------------------------------------------------------------------------- #
# Kernels
# --------------------------------------------------------------------------- #

def _linear_kernel_single_k(x_ref, w_ref, b_ref, o_ref, *, compute_dtype):
    # Whole contraction dim fits in one tile: no accumulator scratch needed.
    acc = jnp.dot(x_ref[...].astype(compute_dtype),
                  w_ref[...].astype(compute_dtype),
                  preferred_element_type=jnp.float32)
    o_ref[...] = (acc + b_ref[...]).astype(o_ref.dtype)


def _linear_kernel_multi_k(x_ref, w_ref, b_ref, o_ref, acc_ref, *, compute_dtype):
    k = pl.program_id(2)

    @pl.when(k == 0)
    def _():
        # Fold the bias into the accumulator init (saves an epilogue VPU add).
        acc_ref[...] = jnp.broadcast_to(b_ref[...], acc_ref.shape).astype(jnp.float32)

    acc_ref[...] += jnp.dot(x_ref[...].astype(compute_dtype),
                            w_ref[...].astype(compute_dtype),
                            preferred_element_type=jnp.float32)

    @pl.when(k == pl.num_programs(2) - 1)
    def _():
        o_ref[...] = acc_ref[...].astype(o_ref.dtype)


# --------------------------------------------------------------------------- #
# Tile selection
# --------------------------------------------------------------------------- #

def _pick_contraction_tile(K: int):
    """Return (tk, needs_explicit_zero_pad). K must be tiled exactly."""
    if K <= 2048:
        return K, False                      # single K step, no K grid loop
    for c in (2048, 1024, 512, 256, 128):
        if K % c == 0:
            return c, False                  # exact divisor, no padding
    # Rare: no clean divisor. Minimize Kp - K and zero-pad explicitly.
    best = min((2048, 1024, 512, 256, 128),
               key=lambda c: (_round_up(K, c) - K, -c))
    return best, True


def _pick_free_tile(D: int, max_single: int, candidates) -> int:
    """Non-contraction dim: one exact tile if small, else min-waste candidate."""
    if D <= max_single:
        return D
    best_c, best_waste = None, None
    for c in candidates:                     # descending -> ties go to larger tile
        waste = _round_up(D, c) - D
        if best_waste is None or waste < best_waste:
            best_c, best_waste = c, waste
    return best_c


# --------------------------------------------------------------------------- #
# Wrapper
# --------------------------------------------------------------------------- #

def linear_projector(x, w_t, b, *, compute_dtype=jnp.bfloat16, out_dtype=None,
                     vmem_limit_bytes=48 * 1024 * 1024):
    """y = x @ w_t + b.  x: [..., vision_dim], w_t: [vision_dim, llm_dim], b: [llm_dim]."""
    orig_shape = x.shape
    K = orig_shape[-1]
    Kw, N = w_t.shape
    assert Kw == K, "weight/input contraction dims must match"
    out_dtype = out_dtype or x.dtype

    x2d = x.reshape(-1, K)
    M = x2d.shape[0]

    # ---- padding-aware tile selection ------------------------------------- #
    tk, pad_k = _pick_contraction_tile(K)
    tn = _pick_free_tile(N, 2048, (2048, 1024, 512))
    tm = _pick_free_tile(M, 1024, (1024, 512, 256))

    if pad_k:
        # Only reached when K > 2048 with no clean divisor: zero-pad K so the
        # contraction never sees unspecified boundary values.
        Kp = _round_up(K, tk)
        x2d = jnp.pad(x2d, ((0, 0), (0, Kp - K)))
        w_t = jnp.pad(w_t, ((0, Kp - K), (0, 0)))
    else:
        Kp = K
    k_steps = Kp // tk

    xb = jnp.dtype(x2d.dtype).itemsize
    wb = jnp.dtype(w_t.dtype).itemsize
    ob = jnp.dtype(out_dtype).itemsize

    # ---- VMEM budget: double-buffered tiles (+ f32 accumulator if K loops) - #
    def _vmem_est(tm_, tn_, tk_):
        e = 2 * (tm_ * tk_ * xb + tk_ * tn_ * wb + tn_ * 4 + tm_ * tn_ * ob)
        if k_steps > 1:
            e += tm_ * tn_ * 4
        return e

    TILE_BUDGET = 40 * 1024 * 1024   # headroom under the 48 MiB cap (v7x: 64 MiB physical)
    while _vmem_est(tm, tn, tk) > TILE_BUDGET:
        if tn >= 256 and tn >= tm:
            tn = _round_up(max(tn // 2, 128), 128)
        elif tm >= 16:
            tm = _round_up(max(tm // 2, 8), 8)
        else:
            break

    n_tiles_m = pl.cdiv(M, tm)
    n_tiles_n = pl.cdiv(N, tn)
    Mp = n_tiles_m * tm
    Np = n_tiles_n * tn

    b2d = b.reshape(1, N).astype(jnp.float32)

    cost = pl.CostEstimate(
        flops=2 * Mp * Kp * Np,
        transcendentals=0,
        bytes_accessed=(n_tiles_n * Mp * Kp * xb      # x streamed once per N tile
                        + n_tiles_m * Kp * Np * wb    # W streamed once per M tile
                        + Np * 4                      # bias
                        + Mp * Np * ob),              # output
    )

    # N is the leading grid axis; only mark it 'parallel' when it actually has
    # >= 2 tiles so the v7x megacore split lands on N (halves per-core W traffic).
    if k_steps == 1:
        grid = (n_tiles_n, n_tiles_m)
        semantics = ("parallel", "arbitrary") if n_tiles_n > 1 else ("parallel", "parallel")
        kernel = functools.partial(_linear_kernel_single_k, compute_dtype=compute_dtype)
        in_specs = [
            pl.BlockSpec((tm, tk), lambda n, m: (m, 0)),   # x tile
            pl.BlockSpec((tk, tn), lambda n, m: (0, n)),   # weight column slab
            pl.BlockSpec((1, tn), lambda n, m: (0, n)),    # bias slab (f32)
        ]
        out_spec = pl.BlockSpec((tm, tn), lambda n, m: (m, n))
        scratch = []
    else:
        grid = (n_tiles_n, n_tiles_m, k_steps)
        semantics = (("parallel", "arbitrary", "arbitrary") if n_tiles_n > 1
                     else ("parallel", "parallel", "arbitrary"))
        kernel = functools.partial(_linear_kernel_multi_k, compute_dtype=compute_dtype)
        in_specs = [
            pl.BlockSpec((tm, tk), lambda n, m, k: (m, k)),
            pl.BlockSpec((tk, tn), lambda n, m, k: (k, n)),
            pl.BlockSpec((1, tn), lambda n, m, k: (0, n)),
        ]
        out_spec = pl.BlockSpec((tm, tn), lambda n, m, k: (m, n))
        scratch = [pltpu.VMEM((tm, tn), jnp.float32)]

    out = pl.pallas_call(
        kernel,
        out_shape=jax.ShapeDtypeStruct((M, N), out_dtype),
        grid_spec=pltpu.PrefetchScalarGridSpec(
            num_scalar_prefetch=0,
            grid=grid,
            in_specs=in_specs,
            out_specs=out_spec,
            scratch_shapes=scratch,
        ),
        compiler_params=pltpu.CompilerParams(
            dimension_semantics=semantics,
            vmem_limit_bytes=vmem_limit_bytes,
        ),
        cost_estimate=cost,
    )(x2d, w_t, b2d)

    return out.reshape(*orig_shape[:-1], N)


def init_linear_params(key, vision_dim, llm_dim, dtype=jnp.float32):
    """Deterministic init matching nn.Linear defaults (kaiming-uniform / uniform bound)."""
    k_w, k_b = jax.random.split(key)
    bound = 1.0 / math.sqrt(vision_dim)
    # PyTorch stores weight as [llm_dim, vision_dim]; we keep its transpose.
    w_t = jax.random.uniform(k_w, (vision_dim, llm_dim), dtype, -bound, bound)
    b = jax.random.uniform(k_b, (llm_dim,), dtype, -bound, bound)
    return w_t, b


if __name__ == "__main__":
    key = jax.random.PRNGKey(0)
    k_x, k_p = jax.random.split(key)

    batch, seq, vision_dim, llm_dim = 2, 8, 32, 64
    img_patches = jax.random.normal(k_x, (batch, seq, vision_dim), jnp.float32)

    w_t, b = init_linear_params(k_p, vision_dim, llm_dim)

    y = linear_projector(img_patches, w_t, b)
    y = jax.block_until_ready(y)

    # Reference with the same bf16-operand / f32-accumulate math as the kernel.
    x2d = img_patches.reshape(-1, vision_dim).astype(jnp.bfloat16)
    y_ref = (jnp.dot(x2d, w_t.astype(jnp.bfloat16),
                     preferred_element_type=jnp.float32) + b.astype(jnp.float32))
    y_ref = y_ref.astype(jnp.float32).reshape(batch, seq, llm_dim)

    assert y.shape == (batch, seq, llm_dim)
    assert y.dtype == img_patches.dtype
    assert jnp.allclose(y, y_ref, atol=1e-3, rtol=1e-3)

    print("KERNEL_OK")
</pallas_src>

<mosaic_0001>
module attributes {stable_mosaic.version = 11 : i64} {
  func.func @_linear_kernel_single_k(%arg0: i32, %arg1: i32, %arg2: memref<16x32xf32, #tpu.memory_space<vmem>>, %arg3: memref<32x64xf32, #tpu.memory_space<vmem>>, %arg4: memref<1x64xf32, #tpu.memory_space<vmem>>, %arg5: memref<16x64xf32, #tpu.memory_space<vmem>>) attributes {dimension_semantics = [#tpu.dimension_semantics<parallel>, #tpu.dimension_semantics<parallel>], iteration_bounds = array<i64: 1, 1>, scalar_prefetch = 0 : i64, scratch_operands = 0 : i64, tpu.core_type = #tpu.core_type<tc>, window_params = [{transform_indices = @transform_0, window_bounds = array<i64: 16, 32>}, {transform_indices = @transform_1, window_bounds = array<i64: 32, 64>}, {transform_indices = @transform_2, window_bounds = array<i64: 1, 64>}, {transform_indices = @transform_3, window_bounds = array<i64: 16, 64>}]} {
    %c0 = arith.constant 0 : index
    %c0_0 = arith.constant 0 : index
    %0 = vector.load %arg2[%c0, %c0_0] : memref<16x32xf32, #tpu.memory_space<vmem>>, vector<16x32xf32>
    %1 = arith.truncf %0 : vector<16x32xf32> to vector<16x32xbf16>
    %c0_1 = arith.constant 0 : index
    %c0_2 = arith.constant 0 : index
    %2 = vector.load %arg3[%c0_1, %c0_2] : memref<32x64xf32, #tpu.memory_space<vmem>>, vector<32x64xf32>
    %3 = arith.truncf %2 : vector<32x64xf32> to vector<32x64xbf16>
    %cst = arith.constant dense<0.000000e+00> : vector<16x64xf32>
    %4 = tpu.matmul %1, %3, %cst {dimension_numbers = #tpu.dot_dimension_numbers<[1], [0], [0], [1], [0, 0, 1, 1], [], []>} : vector<16x32xbf16>, vector<32x64xbf16>, vector<16x64xf32> -> vector<16x64xf32>
    %c0_3 = arith.constant 0 : index
    %c0_4 = arith.constant 0 : index
    %5 = vector.load %arg4[%c0_3, %c0_4] : memref<1x64xf32, #tpu.memory_space<vmem>>, vector<1x64xf32>
    %6 = vector.broadcast %5 : vector<1x64xf32> to vector<16x64xf32>
    %7 = arith.addf %4, %6 : vector<16x64xf32>
    %c0_5 = arith.constant 0 : index
    %c0_6 = arith.constant 0 : index
    %8 = vector.load %arg5[%c0_5, %c0_6] : memref<16x64xf32, #tpu.memory_space<vmem>>, vector<16x64xf32>
    tpu.vector_store %arg5[%c0_5, %c0_6], %7 {strides = array<i32>} : memref<16x64xf32, #tpu.memory_space<vmem>>, vector<16x64xf32>,
    return
  }
  func.func @transform_0(%arg0: i32, %arg1: i32) -> (i32, i32) {
    %c0_i32 = arith.constant 0 : i32
    %c0_i32_0 = arith.constant 0 : i32
    return %arg1, %c0_i32 : i32, i32
  }
  func.func @transform_1(%arg0: i32, %arg1: i32) -> (i32, i32) {
    %c0_i32 = arith.constant 0 : i32
    %c0_i32_0 = arith.constant 0 : i32
    return %c0_i32, %arg0 : i32, i32
  }
  func.func @transform_2(%arg0: i32, %arg1: i32) -> (i32, i32) {
    %c0_i32 = arith.constant 0 : i32
    %c0_i32_0 = arith.constant 0 : i32
    return %c0_i32, %arg0 : i32, i32
  }
  func.func @transform_3(%arg0: i32, %arg1: i32) -> (i32, i32) {
    %c0_i32 = arith.constant 0 : i32
    return %arg1, %arg0 : i32, i32
  }
}

</mosaic_0001>

<bundles_post_ra>
// kernel: tpu_custom_call.1
= control target key start
LH: loop header
LB: loop body
LE: loop exit
PB: predicated region body
PF: predicated region fallthrough
CT: control target
= control target key end

     0   :  { %8 = vsyncpa [#allocation3], 0  ;;  %s293_s0 = inlined_call_operand.hbm [shape: f32[16,32], index: 0, kind: input, shape index: {}]   ;;  %s294_s1 = inlined_call_operand.hbm [shape: f32[32,64], index: 1, kind: input, shape index: {}]   ;;  %s295_s2 = inlined_call_operand.vmem [shape: f32[1,64], index: 2, kind: input, shape index: {}]   ;;  %s296_s3 = inlined_call_operand.hbm [shape: f32[16,64], index: 3, kind: output, shape index: {}]  }
   0x1   :  { %9 = vsyncpa [#allocation6], 0 }
   0x2   :  { %10 = vsyncpa [#allocation4], 0  ;;  %s218_s12 = smov [#allocation2]   ;;  %s146_s16 = scalar_lea.hbm %s293_s0, 256 }
   0x3   :  { %s16_s13 = sshll.u32 %s218_s12, 4  ;;  %p147_p0 = scmp.ne.s32.totalorder %s293_s0, %s146_s16  ;;  %s17_s13 = int_to_ptr.vmem [resolvable:$true] %s16_s13 }
   0x4   :  { %p150_p1 = scmp.lt.u32.totalorder %s146_s16, %s293_s0 }
   0x6   :  { %p152_p2 = pnand %p150_p1, %p147_p0 }
   0x8   :  { %155 = shalt.err (!%p152_p2)
}
   0x9   :  { %s156_s21 = scalar_lea.vmem %s17_s13, 256  ;;  %p161_p4 = scmp.lt.s32.totalorder %s17_s13, %s17_s13 }
   0xa   :  { %p157_p3 = scmp.ne.s32.totalorder %s17_s13, %s156_s21  ;;  %p162_p5 = scmp.lt.s32.totalorder %s156_s21, %s156_s21 }
   0xc   :  { %p163_p6 = por %p162_p5, %p161_p4 }
   0xe   :  { %p164_p7 = pnand %p163_p6, %p157_p3 }
  0x10   :  { %167 = shalt.err (!%p164_p7)
}
  0x11   :  { %s219_s22 = smov 128   ;;  %s220_s23 = smov 8  }
  0x12   :  { %22 = dma.hbm_to_vmem [thread:$0]  %s293_s0, 256, %s17_s13, [#allocation3], %s219_s22, %s219_s22, %s220_s23  }
  0x13   :  { %s221_s26 = smov [#allocation5]   ;;  %s168_s30 = scalar_lea.hbm %s294_s1, 512 }
  0x14   :  { %s28_s27 = sshll.u32 %s221_s26, 4  ;;  %p169_p8 = scmp.ne.s32.totalorder %s294_s1, %s168_s30  ;;  %s29_s27 = int_to_ptr.vmem [resolvable:$true] %s28_s27 }
  0x15   :  { %p172_p9 = scmp.lt.u32.totalorder %s168_s30, %s294_s1 }
  0x17   :  { %p174_p10 = pnand %p172_p9, %p169_p8 }
  0x19   :  { %177 = shalt.err (!%p174_p10)
}
  0x1a   :  { %s178_s8 = scalar_lea.vmem %s29_s27, 512  ;;  %p183_p12 = scmp.lt.s32.totalorder %s29_s27, %s29_s27 }
  0x1b   :  { %p179_p11 = scmp.ne.s32.totalorder %s29_s27, %s178_s8  ;;  %p184_p13 = scmp.lt.s32.totalorder %s178_s8, %s178_s8 }
  0x1d   :  { %p185_p0 = por %p184_p13, %p183_p12 }
  0x1f   :  { %p186_p1 = pnand %p185_p0, %p179_p11 }
  0x21   :  { %189 = shalt.err (!%p186_p1)
}
  0x22   :  { %34 = dma.hbm_to_vmem [thread:$0]  %s294_s1, 512, %s29_s27, [#allocation6], %s219_s22, %s219_s22, %s220_s23  }
  0x23   :  { %212 = dma.done.wait [#allocation3], 256  }
  0x24   :  { %213 = vsyncadd [#allocation3], 4294967040 }
  0x25   :  { %214 = dma.done.wait [#allocation6], 512  }
  0x26   :  { %215 = vsyncadd [#allocation6], 4294966784  ;;  %v222_v0 = vmov 0.0   ;;  %vm223_vm0 = vmmov 0   ;;  %v47_v1 = vld [vmem:[#allocation5] sm:$0xff]  ;;  %v48_v2 = vld [vmem:[#allocation5 + $0x8] sm:$0xff] }
  0x27   :  { %131 = vmatprep.subr.bf16.mxu0 %v222_v0  ;;  %135 = vmatprep.mubr.msk.bf16.mxu0 %vm223_vm0, %v222_v0  ;;  %v49_v3 = vld [vmem:[#allocation5 + $0x10] sm:$0xff]  ;;  %v51_v4 = vpack.c.bf16 %v48_v2, %v47_v1  ;;  %v50_v5 = vld [vmem:[#allocation5 + $0x18] sm:$0xff]  ;;  %vm60_vm1 = vcmask 261120   ;;  %vm105_vm2 = vcmask 523264   ;;  %s224_s11 = smov [#allocation7]  }
  0x28   :  { %v52_v6 = vpack.c.bf16 %v50_v5, %v49_v3  ;;  %v44_v7 = vld [vmem:[#allocation2] sm:$0xff]  ;;  %v45_v8 = vld [vmem:[#allocation2 + $0x8] sm:$0xff]  ;;  %s113_s12 = sshll.u32 %s224_s11, 4  ;;  %s114_s12 = int_to_ptr.vmem [resolvable:$true] %s113_s12 }
  0x29   :  { %132 = vmatpush3.bf16.msra.mxu0 %v51_v4  ;;  %v46_v9 = vpack.c.bf16 %v45_v8, %v44_v7  ;;  %v126_v10 = vld [vmem:[%s295_s2] ss:$0 sm:$0xff]  ;;  %s190_s13 = scalar_lea.vmem %s114_s12, 256  ;;  %p195_p3 = scmp.lt.s32.totalorder %s114_s12, %s114_s12 }
  0x2a   :  { %133 = vmatprep.subr.bf16.mxu0 %v222_v0  ;;  %p191_p2 = scmp.ne.s32.totalorder %s114_s12, %s190_s13  ;;  %p196_p4 = scmp.lt.s32.totalorder %s190_s13, %s190_s13 }
  0x2c   :  { %p197_p5 = por %p196_p4, %p195_p3 }
  0x2d   :  { %134 = vmatpush3.bf16.msra.mxu0 %v52_v6 }
  0x2e   :  { %p198_p6 = pnand %p197_p5, %p191_p2 }
  0x30   :  { %136 = vmatmul.mubr.msk.bf16.vlgmr.msra.gmra.mrb[0].mxu0 %vm60_vm1, %v46_v9 }
 0x103   :  { %v98_v11 = vpop.f32.mrb[0].mxu0 }
 0x104   :  { %v99_v12 = vadd.f32 %v126_v10, %v98_v11  ;;  %v137_v13 = vpop.f32.mrb[1].mxu0 }
 0x105   :  { %v101_v14 = vpop.f32.mrb[2].mxu0 }
 0x106   :  { %v102_v15 = vadd.f32 %v126_v10, %v101_v14  ;;  %v138_v16 = vpop.f32.mrb[3].mxu0  ;;  %106 = vst.msk [vmem:[#allocation7] sm:$0xff] %vm105_vm2, %v99_v12 }
 0x108   :  { %107 = vst.msk [vmem:[#allocation7 + $0x8] sm:$0xff] %vm105_vm2, %v102_v15 }
 0x109   :  { %201 = shalt.err (!%p198_p6)
}
 0x10a   :  { %s202_s15 = scalar_lea.hbm %s296_s3, 256 }
 0x10b   :  { %p203_p7 = scmp.ne.s32.totalorder %s296_s3, %s202_s15  ;;  %p206_p8 = scmp.lt.u32.totalorder %s202_s15, %s296_s3 }
 0x10d   :  { %p208_p9 = pnand %p206_p8, %p203_p7 }
 0x10f   :  { %211 = shalt.err (!%p208_p9)
}
 0x110   :  { %119 = dma.vmem_to_hbm [thread:$0]  %s114_s12, 256, %s296_s3, [#allocation4], %s219_s22, %s219_s22, %s220_s23  }
 0x111   :  { %216 = dma.done.wait [#allocation4], 256  }
 0x112   :  { %217 = vsyncadd [#allocation4], 4294967040 }
 0x113   :  { %123 = vsyncpa [#allocation3], 1 }
 0x114   :  { %124 = vsyncpa [#allocation6], 1 }
 0x115   :  { %125 = vsyncpa [#allocation4], 1 }

</bundles_post_ra>
